<compile_context>
chip_gen: v7x
topology: tpu7x:2x2x1
jax: 0.10.0
libtpu: 0.0.40
codegen_flags: <defaults>
</compile_context>

<pallas_src>
import functools

import jax
import jax.numpy as jnp
from jax.experimental import pallas as pl
from jax.experimental.pallas import tpu as pltpu

BN_EPS = 1e-5
LANE = 128


def _round_up(n, m):
    return ((n + m - 1) // m) * m


def _make_kernel(dn, mxu_dtype):
    """Build the fused BYOL kernel. One grid step == one augmented view."""

    def kernel(
        x_ref,
        w_net_ref, b_net_ref,                                              # online||target base net
        w1_op_ref, b1_op_ref, g_op_ref, be_op_ref, w2_op_ref, b2_op_ref,   # online projector
        w1_tp_ref, b1_tp_ref, g_tp_ref, be_tp_ref, w2_tp_ref, b2_tp_ref,   # target projector
        w1_pr_ref, b1_pr_ref, g_pr_ref, be_pr_ref, w2_pr_ref, b2_pr_ref,   # online predictor
        tgt_ref, onl_ref,
    ):
        x = x_ref[...]                                  # [B, DI] in mxu_dtype

        def linear(h, w_ref, b_ref):
            # MXU matmul in mxu_dtype (bf16 on v6e/v7x), f32 accumulation.
            return jnp.dot(h.astype(mxu_dtype), w_ref[...],
                           preferred_element_type=jnp.float32) + b_ref[...]

        def mlp(h, w1_ref, b1_ref, g_ref, be_ref, w2_ref, b2_ref):
            # Linear -> BatchNorm1d (train mode, biased var) -> ReLU -> Linear.
            h1 = linear(h, w1_ref, b1_ref)              # f32
            mu = jnp.mean(h1, axis=0, keepdims=True)
            var = jnp.mean(h1 * h1, axis=0, keepdims=True) - mu * mu   # one-pass, f32
            var = jnp.maximum(var, 0.0)
            h1 = (h1 - mu) * jax.lax.rsqrt(var + BN_EPS) * g_ref[...] + be_ref[...]
            h1 = jnp.maximum(h1, 0.0)
            return linear(h1, w2_ref, b2_ref)

        # One fat matmul covers both base nets (they share the input x).
        h_base = linear(x, w_net_ref, b_net_ref)        # [B, 2*DN] f32
        h_o = h_base[:, :dn]
        h_t = h_base[:, dn:]

        # Target branch: target_projector(target_net(x)).
        tgt_ref[...] = mlp(h_t, w1_tp_ref, b1_tp_ref, g_tp_ref, be_tp_ref,
                           w2_tp_ref, b2_tp_ref)

        # Online branch: online_predictor(online_projector(online_net(x))).
        z = mlp(h_o, w1_op_ref, b1_op_ref, g_op_ref, be_op_ref,
                w2_op_ref, b2_op_ref)
        onl_ref[...] = mlp(z, w1_pr_ref, b1_pr_ref, g_pr_ref, be_pr_ref,
                           w2_pr_ref, b2_pr_ref)

    return kernel


@functools.partial(jax.jit, static_argnames=("mxu_dtype",))
def byol_forward(x1, x2, params, mxu_dtype=jnp.bfloat16):
    """BYOL.forward(x1, x2) -> (tgt_emb_1, tgt_emb_2, online_pred_1, online_pred_2)."""
    B, in_dim = x1.shape
    net_out = params["w_net_o"].shape[1]
    hidden = params["w1_op"].shape[1]
    proj = params["w2_op"].shape[1]

    di = _round_up(in_dim, LANE)
    dn = _round_up(net_out, LANE)
    dh = _round_up(hidden, LANE)
    dp = _round_up(proj, LANE)

    def pad_w(a, r, c):       # zero-pad weight to [r, c]; MXU dtype
        return jnp.pad(a, ((0, r - a.shape[0]), (0, c - a.shape[1]))).astype(mxu_dtype)

    def pad_row(a, c):        # zero-pad bias/gamma/beta row to [1, c]; keep f32
        return jnp.pad(a, ((0, 0), (0, c - a.shape[1]))).astype(jnp.float32)

    # Both views stacked: view v occupies rows [v*B, (v+1)*B).  Lane-padded.
    x_all = jnp.concatenate([x1, x2], axis=0)
    x_all = jnp.pad(x_all, ((0, 0), (0, di - in_dim))).astype(mxu_dtype)

    # online_net || target_net weights concatenated along the output dim.
    w_net = jnp.concatenate([pad_w(params["w_net_o"], di, dn),
                             pad_w(params["w_net_t"], di, dn)], axis=1)   # [di, 2*dn]
    b_net = jnp.concatenate([pad_row(params["b_net_o"], dn),
                             pad_row(params["b_net_t"], dn)], axis=1)     # [1, 2*dn]

    def pack_mlp(tag, dk):
        return (pad_w(params[f"w1_{tag}"], dk, dh), pad_row(params[f"b1_{tag}"], dh),
                pad_row(params[f"g_{tag}"], dh), pad_row(params[f"be_{tag}"], dh),
                pad_w(params[f"w2_{tag}"], dh, dp), pad_row(params[f"b2_{tag}"], dp))

    weights = (w_net, b_net) + pack_mlp("op", dn) + pack_mlp("tp", dn) + pack_mlp("pr", dp)

    x_spec = pl.BlockSpec((B, di), lambda v: (v, 0))
    w_specs = [pl.BlockSpec(w.shape, lambda v: (0, 0)) for w in weights]
    out_spec = pl.BlockSpec((B, dp), lambda v: (v, 0))

    tgt, onl = pl.pallas_call(
        _make_kernel(dn, mxu_dtype),
        grid=(2,),                                   # one grid step per augmented view
        in_specs=[x_spec] + w_specs,
        out_specs=(out_spec, out_spec),
        out_shape=(jax.ShapeDtypeStruct((2 * B, dp), jnp.float32),
                   jax.ShapeDtypeStruct((2 * B, dp), jnp.float32)),
        compiler_params=pltpu.CompilerParams(
            dimension_semantics=("parallel",),       # 2 views -> 2 TCs on v7x
            vmem_limit_bytes=32 * 1024 * 1024,
        ),
    )(x_all, *weights)

    tgt = tgt[:, :proj]
    onl = onl[:, :proj]
    return tgt[:B], tgt[B:], onl[:B], onl[B:]


def init_params(key, in_dim, net_output_dim, hidden_size, projection_size):
    """Deterministic synthetic parameter init (target nets = deepcopy of online)."""
    ks = jax.random.split(key, 12)
    f32 = jnp.float32

    def w(k, shape, fan_in):
        return jax.random.uniform(k, shape, f32, -1.0, 1.0) / jnp.sqrt(f32(fan_in))

    # online base net: Linear(in_dim, net_output_dim)
    w_net = w(ks[0], (in_dim, net_output_dim), in_dim)
    b_net = w(ks[1], (1, net_output_dim), in_dim)

    # online projector: MLP(net_output_dim, projection_size, hidden_size)
    w1_op = w(ks[2], (net_output_dim, hidden_size), net_output_dim)
    b1_op = w(ks[3], (1, hidden_size), net_output_dim)
    g_op = jnp.ones((1, hidden_size), f32)
    be_op = jnp.zeros((1, hidden_size), f32)
    w2_op = w(ks[4], (hidden_size, projection_size), hidden_size)
    b2_op = w(ks[5], (1, projection_size), hidden_size)

    # online predictor: MLP(projection_size, projection_size, hidden_size)
    w1_pr = w(ks[6], (projection_size, hidden_size), projection_size)
    b1_pr = w(ks[7], (1, hidden_size), projection_size)
    g_pr = jnp.ones((1, hidden_size), f32)
    be_pr = jnp.zeros((1, hidden_size), f32)
    w2_pr = w(ks[8], (hidden_size, projection_size), hidden_size)
    b2_pr = w(ks[9], (1, projection_size), hidden_size)

    return dict(
        w_net_o=w_net, b_net_o=b_net,
        # deepcopy semantics: target starts identical to online
        w_net_t=w_net, b_net_t=b_net,
        w1_op=w1_op, b1_op=b1_op, g_op=g_op, be_op=be_op, w2_op=w2_op, b2_op=b2_op,
        w1_tp=w1_op, b1_tp=b1_op, g_tp=g_op, be_tp=be_op, w2_tp=w2_op, b2_tp=b2_op,
        w1_pr=w1_pr, b1_pr=b1_pr, g_pr=g_pr, be_pr=be_pr, w2_pr=w2_pr, b2_pr=b2_pr,
    )


def _reference_forward(x1, x2, p, mxu_dtype=jnp.float32):
    """Pure-JAX reference (two-pass BN variance, like PyTorch)."""

    def linear(h, w, b):
        return jnp.dot(h.astype(mxu_dtype), w.astype(mxu_dtype),
                       preferred_element_type=jnp.float32) + b

    def mlp(h, w1, b1, g, be, w2, b2):
        h1 = linear(h, w1, b1)
        mu = jnp.mean(h1, axis=0, keepdims=True)
        var = jnp.mean((h1 - mu) ** 2, axis=0, keepdims=True)
        h1 = (h1 - mu) / jnp.sqrt(var + BN_EPS) * g + be
        h1 = jnp.maximum(h1, 0.0)
        return linear(h1, w2, b2)

    def view(x):
        h_t = linear(x, p["w_net_t"], p["b_net_t"])
        tgt = mlp(h_t, p["w1_tp"], p["b1_tp"], p["g_tp"], p["be_tp"],
                  p["w2_tp"], p["b2_tp"])
        h_o = linear(x, p["w_net_o"], p["b_net_o"])
        z = mlp(h_o, p["w1_op"], p["b1_op"], p["g_op"], p["be_op"],
                p["w2_op"], p["b2_op"])
        onl = mlp(z, p["w1_pr"], p["b1_pr"], p["g_pr"], p["be_pr"],
                  p["w2_pr"], p["b2_pr"])
        return tgt, onl

    t1, o1 = view(x1)
    t2, o2 = view(x2)
    return t1, t2, o1, o2


if __name__ == "__main__":
    # Small, forward-consistent shapes (BatchNorm1d training mode needs B > 1).
    B = 8
    IN_DIM = 16
    NET_OUT = 32
    HIDDEN = 64
    PROJ = 32

    key = jax.random.PRNGKey(0)
    k_x1, k_x2, k_p = jax.random.split(key, 3)
    x1 = jax.random.normal(k_x1, (B, IN_DIM), jnp.float32)
    x2 = jax.random.normal(k_x2, (B, IN_DIM), jnp.float32)
    params = init_params(k_p, IN_DIM, NET_OUT, HIDDEN, PROJ)

    # bf16-MXU path (the production configuration on v6e/v7x).
    out_bf16 = jax.block_until_ready(byol_forward(x1, x2, params, mxu_dtype=jnp.bfloat16))
    # f32-MXU path (strict semantic check against the pure-f32 reference).
    out_f32 = jax.block_until_ready(byol_forward(x1, x2, params, mxu_dtype=jnp.float32))

    ref_f32 = _reference_forward(x1, x2, params, mxu_dtype=jnp.float32)
    ref_bf16 = _reference_forward(x1, x2, params, mxu_dtype=jnp.bfloat16)

    for o, r in zip(out_f32, ref_f32):
        assert o.shape == (B, PROJ)
        assert float(jnp.max(jnp.abs(o - r))) < 2e-3, "f32 mismatch vs JAX reference"
    for o, r in zip(out_bf16, ref_bf16):
        assert o.shape == (B, PROJ)
        assert float(jnp.max(jnp.abs(o - r))) < 1e-2, "bf16 mismatch vs JAX reference"

    print("KERNEL_OK")
</pallas_src>

<mosaic_0001>
module attributes {stable_mosaic.version = 11 : i64} {
  func.func @kernel(%arg0: i32, %arg1: memref<8x128xbf16, #tpu.memory_space<vmem>>, %arg2: memref<128x256xbf16, #tpu.memory_space<vmem>>, %arg3: memref<1x256xf32, #tpu.memory_space<vmem>>, %arg4: memref<128x128xbf16, #tpu.memory_space<vmem>>, %arg5: memref<1x128xf32, #tpu.memory_space<vmem>>, %arg6: memref<1x128xf32, #tpu.memory_space<vmem>>, %arg7: memref<1x128xf32, #tpu.memory_space<vmem>>, %arg8: memref<128x128xbf16, #tpu.memory_space<vmem>>, %arg9: memref<1x128xf32, #tpu.memory_space<vmem>>, %arg10: memref<128x128xbf16, #tpu.memory_space<vmem>>, %arg11: memref<1x128xf32, #tpu.memory_space<vmem>>, %arg12: memref<1x128xf32, #tpu.memory_space<vmem>>, %arg13: memref<1x128xf32, #tpu.memory_space<vmem>>, %arg14: memref<128x128xbf16, #tpu.memory_space<vmem>>, %arg15: memref<1x128xf32, #tpu.memory_space<vmem>>, %arg16: memref<128x128xbf16, #tpu.memory_space<vmem>>, %arg17: memref<1x128xf32, #tpu.memory_space<vmem>>, %arg18: memref<1x128xf32, #tpu.memory_space<vmem>>, %arg19: memref<1x128xf32, #tpu.memory_space<vmem>>, %arg20: memref<128x128xbf16, #tpu.memory_space<vmem>>, %arg21: memref<1x128xf32, #tpu.memory_space<vmem>>, %arg22: memref<8x128xf32, #tpu.memory_space<vmem>>, %arg23: memref<8x128xf32, #tpu.memory_space<vmem>>) attributes {dimension_semantics = [#tpu.dimension_semantics<parallel>], iteration_bounds = array<i64: 2>, scalar_prefetch = 0 : i64, scratch_operands = 0 : i64, tpu.core_type = #tpu.core_type<tc>, window_params = [{transform_indices = @transform_0, window_bounds = array<i64: 8, 128>}, {pipeline_mode = #tpu.pipeline_mode<synchronous>, transform_indices = @transform_1, window_bounds = array<i64: 128, 256>}, {pipeline_mode = #tpu.pipeline_mode<synchronous>, transform_indices = @transform_2, window_bounds = array<i64: 1, 256>}, {pipeline_mode = #tpu.pipeline_mode<synchronous>, transform_indices = @transform_3, window_bounds = array<i64: 128, 128>}, {pipeline_mode = #tpu.pipeline_mode<synchronous>, transform_indices = @transform_4, window_bounds = array<i64: 1, 128>}, {pipeline_mode = #tpu.pipeline_mode<synchronous>, transform_indices = @transform_5, window_bounds = array<i64: 1, 128>}, {pipeline_mode = #tpu.pipeline_mode<synchronous>, transform_indices = @transform_6, window_bounds = array<i64: 1, 128>}, {pipeline_mode = #tpu.pipeline_mode<synchronous>, transform_indices = @transform_7, window_bounds = array<i64: 128, 128>}, {pipeline_mode = #tpu.pipeline_mode<synchronous>, transform_indices = @transform_8, window_bounds = array<i64: 1, 128>}, {pipeline_mode = #tpu.pipeline_mode<synchronous>, transform_indices = @transform_9, window_bounds = array<i64: 128, 128>}, {pipeline_mode = #tpu.pipeline_mode<synchronous>, transform_indices = @transform_10, window_bounds = array<i64: 1, 128>}, {pipeline_mode = #tpu.pipeline_mode<synchronous>, transform_indices = @transform_11, window_bounds = array<i64: 1, 128>}, {pipeline_mode = #tpu.pipeline_mode<synchronous>, transform_indices = @transform_12, window_bounds = array<i64: 1, 128>}, {pipeline_mode = #tpu.pipeline_mode<synchronous>, transform_indices = @transform_13, window_bounds = array<i64: 128, 128>}, {pipeline_mode = #tpu.pipeline_mode<synchronous>, transform_indices = @transform_14, window_bounds = array<i64: 1, 128>}, {pipeline_mode = #tpu.pipeline_mode<synchronous>, transform_indices = @transform_15, window_bounds = array<i64: 128, 128>}, {pipeline_mode = #tpu.pipeline_mode<synchronous>, transform_indices = @transform_16, window_bounds = array<i64: 1, 128>}, {pipeline_mode = #tpu.pipeline_mode<synchronous>, transform_indices = @transform_17, window_bounds = array<i64: 1, 128>}, {pipeline_mode = #tpu.pipeline_mode<synchronous>, transform_indices = @transform_18, window_bounds = array<i64: 1, 128>}, {pipeline_mode = #tpu.pipeline_mode<synchronous>, transform_indices = @transform_19, window_bounds = array<i64: 128, 128>}, {pipeline_mode = #tpu.pipeline_mode<synchronous>, transform_indices = @transform_20, window_bounds = array<i64: 1, 128>}, {transform_indices = @transform_21, window_bounds = array<i64: 8, 128>}, {transform_indices = @transform_22, window_bounds = array<i64: 8, 128>}]} {
    %c0 = arith.constant 0 : index
    %c0_0 = arith.constant 0 : index
    %0 = vector.load %arg1[%c0, %c0_0] : memref<8x128xbf16, #tpu.memory_space<vmem>>, vector<8x128xbf16>
    %c0_1 = arith.constant 0 : index
    %c0_2 = arith.constant 0 : index
    %1 = vector.load %arg2[%c0_1, %c0_2] : memref<128x256xbf16, #tpu.memory_space<vmem>>, vector<128x256xbf16>
    %cst = arith.constant dense<0.000000e+00> : vector<8x256xf32>
    %2 = tpu.matmul %0, %1, %cst {dimension_numbers = #tpu.dot_dimension_numbers<[1], [0], [0], [1], [0, 0, 1, 1], [], []>} : vector<8x128xbf16>, vector<128x256xbf16>, vector<8x256xf32> -> vector<8x256xf32>
    %c0_3 = arith.constant 0 : index
    %c0_4 = arith.constant 0 : index
    %3 = vector.load %arg3[%c0_3, %c0_4] : memref<1x256xf32, #tpu.memory_space<vmem>>, vector<1x256xf32>
    %4 = vector.broadcast %3 : vector<1x256xf32> to vector<8x256xf32>
    %5 = arith.addf %2, %4 : vector<8x256xf32>
    %6 = vector.extract_strided_slice %5 {offsets = [0, 0], sizes = [8, 128], strides = [1, 1]} : vector<8x256xf32> to vector<8x128xf32>
    %7 = vector.extract_strided_slice %5 {offsets = [0, 128], sizes = [8, 128], strides = [1, 1]} : vector<8x256xf32> to vector<8x128xf32>
    %8 = arith.truncf %7 : vector<8x128xf32> to vector<8x128xbf16>
    %c0_5 = arith.constant 0 : index
    %c0_6 = arith.constant 0 : index
    %9 = vector.load %arg10[%c0_5, %c0_6] : memref<128x128xbf16, #tpu.memory_space<vmem>>, vector<128x128xbf16>
    %cst_7 = arith.constant dense<0.000000e+00> : vector<8x128xf32>
    %10 = tpu.matmul %8, %9, %cst_7 {dimension_numbers = #tpu.dot_dimension_numbers<[1], [0], [0], [1], [0, 0, 1, 1], [], []>} : vector<8x128xbf16>, vector<128x128xbf16>, vector<8x128xf32> -> vector<8x128xf32>
    %c0_8 = arith.constant 0 : index
    %c0_9 = arith.constant 0 : index
    %11 = vector.load %arg11[%c0_8, %c0_9] : memref<1x128xf32, #tpu.memory_space<vmem>>, vector<1x128xf32>
    %12 = vector.broadcast %11 : vector<1x128xf32> to vector<8x128xf32>
    %13 = arith.addf %10, %12 : vector<8x128xf32>
    %cst_10 = arith.constant dense<0.000000e+00> : vector<128xf32>
    %14 = vector.multi_reduction <add>, %13, %cst_10 [0] : vector<8x128xf32> to vector<128xf32>
    %15 = vector.shape_cast %14 : vector<128xf32> to vector<1x128xf32>
    %cst_11 = arith.constant 8.000000e+00 : f32
    %16 = vector.broadcast %cst_11 : f32 to vector<1x128xf32>
    %17 = arith.divf %15, %16 : vector<1x128xf32>
    %18 = arith.mulf %13, %13 : vector<8x128xf32>
    %cst_12 = arith.constant dense<0.000000e+00> : vector<128xf32>
    %19 = vector.multi_reduction <add>, %18, %cst_12 [0] : vector<8x128xf32> to vector<128xf32>
    %20 = vector.shape_cast %19 : vector<128xf32> to vector<1x128xf32>
    %cst_13 = arith.constant 8.000000e+00 : f32
    %21 = vector.broadcast %cst_13 : f32 to vector<1x128xf32>
    %22 = arith.divf %20, %21 : vector<1x128xf32>
    %23 = arith.mulf %17, %17 : vector<1x128xf32>
    %24 = arith.subf %22, %23 : vector<1x128xf32>
    %cst_14 = arith.constant 0.000000e+00 : f32
    %25 = vector.broadcast %cst_14 : f32 to vector<1x128xf32>
    %26 = arith.maximumf %24, %25 : vector<1x128xf32>
    %27 = vector.broadcast %17 : vector<1x128xf32> to vector<8x128xf32>
    %28 = arith.subf %13, %27 : vector<8x128xf32>
    %cst_15 = arith.constant 9.99999974E-6 : f32
    %29 = vector.broadcast %cst_15 : f32 to vector<1x128xf32>
    %30 = arith.addf %26, %29 : vector<1x128xf32>
    %31 = math.rsqrt %30 : vector<1x128xf32>
    %32 = vector.broadcast %31 : vector<1x128xf32> to vector<8x128xf32>
    %33 = arith.mulf %28, %32 : vector<8x128xf32>
    %c0_16 = arith.constant 0 : index
    %c0_17 = arith.constant 0 : index
    %34 = vector.load %arg12[%c0_16, %c0_17] : memref<1x128xf32, #tpu.memory_space<vmem>>, vector<1x128xf32>
    %35 = vector.broadcast %34 : vector<1x128xf32> to vector<8x128xf32>
    %36 = arith.mulf %33, %35 : vector<8x128xf32>
    %c0_18 = arith.constant 0 : index
    %c0_19 = arith.constant 0 : index
    %37 = vector.load %arg13[%c0_18, %c0_19] : memref<1x128xf32, #tpu.memory_space<vmem>>, vector<1x128xf32>
    %38 = vector.broadcast %37 : vector<1x128xf32> to vector<8x128xf32>
    %39 = arith.addf %36, %38 : vector<8x128xf32>
    %cst_20 = arith.constant 0.000000e+00 : f32
    %40 = vector.broadcast %cst_20 : f32 to vector<8x128xf32>
    %41 = arith.maximumf %39, %40 : vector<8x128xf32>
    %42 = arith.truncf %41 : vector<8x128xf32> to vector<8x128xbf16>
    %c0_21 = arith.constant 0 : index
    %c0_22 = arith.constant 0 : index
    %43 = vector.load %arg14[%c0_21, %c0_22] : memref<128x128xbf16, #tpu.memory_space<vmem>>, vector<128x128xbf16>
    %cst_23 = arith.constant dense<0.000000e+00> : vector<8x128xf32>
    %44 = tpu.matmul %42, %43, %cst_23 {dimension_numbers = #tpu.dot_dimension_numbers<[1], [0], [0], [1], [0, 0, 1, 1], [], []>} : vector<8x128xbf16>, vector<128x128xbf16>, vector<8x128xf32> -> vector<8x128xf32>
    %c0_24 = arith.constant 0 : index
    %c0_25 = arith.constant 0 : index
    %45 = vector.load %arg15[%c0_24, %c0_25] : memref<1x128xf32, #tpu.memory_space<vmem>>, vector<1x128xf32>
    %46 = vector.broadcast %45 : vector<1x128xf32> to vector<8x128xf32>
    %47 = arith.addf %44, %46 : vector<8x128xf32>
    %c0_26 = arith.constant 0 : index
    %c0_27 = arith.constant 0 : index
    %48 = vector.load %arg22[%c0_26, %c0_27] : memref<8x128xf32, #tpu.memory_space<vmem>>, vector<8x128xf32>
    tpu.vector_store %arg22[%c0_26, %c0_27], %47 {strides = array<i32>} : memref<8x128xf32, #tpu.memory_space<vmem>>, vector<8x128xf32>,
    %49 = arith.truncf %6 : vector<8x128xf32> to vector<8x128xbf16>
    %c0_28 = arith.constant 0 : index
    %c0_29 = arith.constant 0 : index
    %50 = vector.load %arg4[%c0_28, %c0_29] : memref<128x128xbf16, #tpu.memory_space<vmem>>, vector<128x128xbf16>
    %cst_30 = arith.constant dense<0.000000e+00> : vector<8x128xf32>
    %51 = tpu.matmul %49, %50, %cst_30 {dimension_numbers = #tpu.dot_dimension_numbers<[1], [0], [0], [1], [0, 0, 1, 1], [], []>} : vector<8x128xbf16>, vector<128x128xbf16>, vector<8x128xf32> -> vector<8x128xf32>
    %c0_31 = arith.constant 0 : index
    %c0_32 = arith.constant 0 : index
    %52 = vector.load %arg5[%c0_31, %c0_32] : memref<1x128xf32, #tpu.memory_space<vmem>>, vector<1x128xf32>
    %53 = vector.broadcast %52 : vector<1x128xf32> to vector<8x128xf32>
    %54 = arith.addf %51, %53 : vector<8x128xf32>
    %cst_33 = arith.constant dense<0.000000e+00> : vector<128xf32>
    %55 = vector.multi_reduction <add>, %54, %cst_33 [0] : vector<8x128xf32> to vector<128xf32>
    %56 = vector.shape_cast %55 : vector<128xf32> to vector<1x128xf32>
    %cst_34 = arith.constant 8.000000e+00 : f32
    %57 = vector.broadcast %cst_34 : f32 to vector<1x128xf32>
    %58 = arith.divf %56, %57 : vector<1x128xf32>
    %59 = arith.mulf %54, %54 : vector<8x128xf32>
    %cst_35 = arith.constant dense<0.000000e+00> : vector<128xf32>
    %60 = vector.multi_reduction <add>, %59, %cst_35 [0] : vector<8x128xf32> to vector<128xf32>
    %61 = vector.shape_cast %60 : vector<128xf32> to vector<1x128xf32>
    %cst_36 = arith.constant 8.000000e+00 : f32
    %62 = vector.broadcast %cst_36 : f32 to vector<1x128xf32>
    %63 = arith.divf %61, %62 : vector<1x128xf32>
    %64 = arith.mulf %58, %58 : vector<1x128xf32>
    %65 = arith.subf %63, %64 : vector<1x128xf32>
    %cst_37 = arith.constant 0.000000e+00 : f32
    %66 = vector.broadcast %cst_37 : f32 to vector<1x128xf32>
    %67 = arith.maximumf %65, %66 : vector<1x128xf32>
    %68 = vector.broadcast %58 : vector<1x128xf32> to vector<8x128xf32>
    %69 = arith.subf %54, %68 : vector<8x128xf32>
    %cst_38 = arith.constant 9.99999974E-6 : f32
    %70 = vector.broadcast %cst_38 : f32 to vector<1x128xf32>
    %71 = arith.addf %67, %70 : vector<1x128xf32>
    %72 = math.rsqrt %71 : vector<1x128xf32>
    %73 = vector.broadcast %72 : vector<1x128xf32> to vector<8x128xf32>
    %74 = arith.mulf %69, %73 : vector<8x128xf32>
    %c0_39 = arith.constant 0 : index
    %c0_40 = arith.constant 0 : index
    %75 = vector.load %arg6[%c0_39, %c0_40] : memref<1x128xf32, #tpu.memory_space<vmem>>, vector<1x128xf32>
    %76 = vector.broadcast %75 : vector<1x128xf32> to vector<8x128xf32>
    %77 = arith.mulf %74, %76 : vector<8x128xf32>
    %c0_41 = arith.constant 0 : index
    %c0_42 = arith.constant 0 : index
    %78 = vector.load %arg7[%c0_41, %c0_42] : memref<1x128xf32, #tpu.memory_space<vmem>>, vector<1x128xf32>
    %79 = vector.broadcast %78 : vector<1x128xf32> to vector<8x128xf32>
    %80 = arith.addf %77, %79 : vector<8x128xf32>
    %cst_43 = arith.constant 0.000000e+00 : f32
    %81 = vector.broadcast %cst_43 : f32 to vector<8x128xf32>
    %82 = arith.maximumf %80, %81 : vector<8x128xf32>
    %83 = arith.truncf %82 : vector<8x128xf32> to vector<8x128xbf16>
    %c0_44 = arith.constant 0 : index
    %c0_45 = arith.constant 0 : index
    %84 = vector.load %arg8[%c0_44, %c0_45] : memref<128x128xbf16, #tpu.memory_space<vmem>>, vector<128x128xbf16>
    %cst_46 = arith.constant dense<0.000000e+00> : vector<8x128xf32>
    %85 = tpu.matmul %83, %84, %cst_46 {dimension_numbers = #tpu.dot_dimension_numbers<[1], [0], [0], [1], [0, 0, 1, 1], [], []>} : vector<8x128xbf16>, vector<128x128xbf16>, vector<8x128xf32> -> vector<8x128xf32>
    %c0_47 = arith.constant 0 : index
    %c0_48 = arith.constant 0 : index
    %86 = vector.load %arg9[%c0_47, %c0_48] : memref<1x128xf32, #tpu.memory_space<vmem>>, vector<1x128xf32>
    %87 = vector.broadcast %86 : vector<1x128xf32> to vector<8x128xf32>
    %88 = arith.addf %85, %87 : vector<8x128xf32>
    %89 = arith.truncf %88 : vector<8x128xf32> to vector<8x128xbf16>
    %c0_49 = arith.constant 0 : index
    %c0_50 = arith.constant 0 : index
    %90 = vector.load %arg16[%c0_49, %c0_50] : memref<128x128xbf16, #tpu.memory_space<vmem>>, vector<128x128xbf16>
    %cst_51 = arith.constant dense<0.000000e+00> : vector<8x128xf32>
    %91 = tpu.matmul %89, %90, %cst_51 {dimension_numbers = #tpu.dot_dimension_numbers<[1], [0], [0], [1], [0, 0, 1, 1], [], []>} : vector<8x128xbf16>, vector<128x128xbf16>, vector<8x128xf32> -> vector<8x128xf32>
    %c0_52 = arith.constant 0 : index
    %c0_53 = arith.constant 0 : index
    %92 = vector.load %arg17[%c0_52, %c0_53] : memref<1x128xf32, #tpu.memory_space<vmem>>, vector<1x128xf32>
    %93 = vector.broadcast %92 : vector<1x128xf32> to vector<8x128xf32>
    %94 = arith.addf %91, %93 : vector<8x128xf32>
    %cst_54 = arith.constant dense<0.000000e+00> : vector<128xf32>
    %95 = vector.multi_reduction <add>, %94, %cst_54 [0] : vector<8x128xf32> to vector<128xf32>
    %96 = vector.shape_cast %95 : vector<128xf32> to vector<1x128xf32>
    %cst_55 = arith.constant 8.000000e+00 : f32
    %97 = vector.broadcast %cst_55 : f32 to vector<1x128xf32>
    %98 = arith.divf %96, %97 : vector<1x128xf32>
    %99 = arith.mulf %94, %94 : vector<8x128xf32>
    %cst_56 = arith.constant dense<0.000000e+00> : vector<128xf32>
    %100 = vector.multi_reduction <add>, %99, %cst_56 [0] : vector<8x128xf32> to vector<128xf32>
    %101 = vector.shape_cast %100 : vector<128xf32> to vector<1x128xf32>
    %cst_57 = arith.constant 8.000000e+00 : f32
    %102 = vector.broadcast %cst_57 : f32 to vector<1x128xf32>
    %103 = arith.divf %101, %102 : vector<1x128xf32>
    %104 = arith.mulf %98, %98 : vector<1x128xf32>
    %105 = arith.subf %103, %104 : vector<1x128xf32>
    %cst_58 = arith.constant 0.000000e+00 : f32
    %106 = vector.broadcast %cst_58 : f32 to vector<1x128xf32>
    %107 = arith.maximumf %105, %106 : vector<1x128xf32>
    %108 = vector.broadcast %98 : vector<1x128xf32> to vector<8x128xf32>
    %109 = arith.subf %94, %108 : vector<8x128xf32>
    %cst_59 = arith.constant 9.99999974E-6 : f32
    %110 = vector.broadcast %cst_59 : f32 to vector<1x128xf32>
    %111 = arith.addf %107, %110 : vector<1x128xf32>
    %112 = math.rsqrt %111 : vector<1x128xf32>
    %113 = vector.broadcast %112 : vector<1x128xf32> to vector<8x128xf32>
    %114 = arith.mulf %109, %113 : vector<8x128xf32>
    %c0_60 = arith.constant 0 : index
    %c0_61 = arith.constant 0 : index
    %115 = vector.load %arg18[%c0_60, %c0_61] : memref<1x128xf32, #tpu.memory_space<vmem>>, vector<1x128xf32>
    %116 = vector.broadcast %115 : vector<1x128xf32> to vector<8x128xf32>
    %117 = arith.mulf %114, %116 : vector<8x128xf32>
    %c0_62 = arith.constant 0 : index
    %c0_63 = arith.constant 0 : index
    %118 = vector.load %arg19[%c0_62, %c0_63] : memref<1x128xf32, #tpu.memory_space<vmem>>, vector<1x128xf32>
    %119 = vector.broadcast %118 : vector<1x128xf32> to vector<8x128xf32>
    %120 = arith.addf %117, %119 : vector<8x128xf32>
    %cst_64 = arith.constant 0.000000e+00 : f32
    %121 = vector.broadcast %cst_64 : f32 to vector<8x128xf32>
    %122 = arith.maximumf %120, %121 : vector<8x128xf32>
    %123 = arith.truncf %122 : vector<8x128xf32> to vector<8x128xbf16>
    %c0_65 = arith.constant 0 : index
    %c0_66 = arith.constant 0 : index
    %124 = vector.load %arg20[%c0_65, %c0_66] : memref<128x128xbf16, #tpu.memory_space<vmem>>, vector<128x128xbf16>
    %cst_67 = arith.constant dense<0.000000e+00> : vector<8x128xf32>
    %125 = tpu.matmul %123, %124, %cst_67 {dimension_numbers = #tpu.dot_dimension_numbers<[1], [0], [0], [1], [0, 0, 1, 1], [], []>} : vector<8x128xbf16>, vector<128x128xbf16>, vector<8x128xf32> -> vector<8x128xf32>
    %c0_68 = arith.constant 0 : index
    %c0_69 = arith.constant 0 : index
    %126 = vector.load %arg21[%c0_68, %c0_69] : memref<1x128xf32, #tpu.memory_space<vmem>>, vector<1x128xf32>
    %127 = vector.broadcast %126 : vector<1x128xf32> to vector<8x128xf32>
    %128 = arith.addf %125, %127 : vector<8x128xf32>
    %c0_70 = arith.constant 0 : index
    %c0_71 = arith.constant 0 : index
    %129 = vector.load %arg23[%c0_70, %c0_71] : memref<8x128xf32, #tpu.memory_space<vmem>>, vector<8x128xf32>
    tpu.vector_store %arg23[%c0_70, %c0_71], %128 {strides = array<i32>} : memref<8x128xf32, #tpu.memory_space<vmem>>, vector<8x128xf32>,
    return
  }
  func.func @transform_0(%arg0: i32) -> (i32, i32) {
    %c0_i32 = arith.constant 0 : i32
    %c0_i32_0 = arith.constant 0 : i32
    return %arg0, %c0_i32 : i32, i32
  }
  func.func @transform_1(%arg0: i32) -> (i32, i32) {
    %c0_i32 = arith.constant 0 : i32
    %c0_i32_0 = arith.constant 0 : i32
    %c0_i32_1 = arith.constant 0 : i32
    return %c0_i32, %c0_i32_0 : i32, i32
  }
  func.func @transform_2(%arg0: i32) -> (i32, i32) {
    %c0_i32 = arith.constant 0 : i32
    %c0_i32_0 = arith.constant 0 : i32
    %c0_i32_1 = arith.constant 0 : i32
    return %c0_i32, %c0_i32_0 : i32, i32
  }
  func.func @transform_3(%arg0: i32) -> (i32, i32) {
    %c0_i32 = arith.constant 0 : i32
    %c0_i32_0 = arith.constant 0 : i32
    %c0_i32_1 = arith.constant 0 : i32
    return %c0_i32, %c0_i32_0 : i32, i32
  }
  func.func @transform_4(%arg0: i32) -> (i32, i32) {
    %c0_i32 = arith.constant 0 : i32
    %c0_i32_0 = arith.constant 0 : i32
    %c0_i32_1 = arith.constant 0 : i32
    return %c0_i32, %c0_i32_0 : i32, i32
  }
  func.func @transform_5(%arg0: i32) -> (i32, i32) {
    %c0_i32 = arith.constant 0 : i32
    %c0_i32_0 = arith.constant 0 : i32
    %c0_i32_1 = arith.constant 0 : i32
    return %c0_i32, %c0_i32_0 : i32, i32
  }
  func.func @transform_6(%arg0: i32) -> (i32, i32) {
    %c0_i32 = arith.constant 0 : i32
    %c0_i32_0 = arith.constant 0 : i32
    %c0_i32_1 = arith.constant 0 : i32
    return %c0_i32, %c0_i32_0 : i32, i32
  }
  func.func @transform_7(%arg0: i32) -> (i32, i32) {
    %c0_i32 = arith.constant 0 : i32
    %c0_i32_0 = arith.constant 0 : i32
    %c0_i32_1 = arith.constant 0 : i32
    return %c0_i32, %c0_i32_0 : i32, i32
  }
  func.func @transform_8(%arg0: i32) -> (i32, i32) {
    %c0_i32 = arith.constant 0 : i32
    %c0_i32_0 = arith.constant 0 : i32
    %c0_i32_1 = arith.constant 0 : i32
    return %c0_i32, %c0_i32_0 : i32, i32
  }
  func.func @transform_9(%arg0: i32) -> (i32, i32) {
    %c0_i32 = arith.constant 0 : i32
    %c0_i32_0 = arith.constant 0 : i32
    %c0_i32_1 = arith.constant 0 : i32
    return %c0_i32, %c0_i32_0 : i32, i32
  }
  func.func @transform_10(%arg0: i32) -> (i32, i32) {
    %c0_i32 = arith.constant 0 : i32
    %c0_i32_0 = arith.constant 0 : i32
    %c0_i32_1 = arith.constant 0 : i32
    return %c0_i32, %c0_i32_0 : i32, i32
  }
  func.func @transform_11(%arg0: i32) -> (i32, i32) {
    %c0_i32 = arith.constant 0 : i32
    %c0_i32_0 = arith.constant 0 : i32
    %c0_i32_1 = arith.constant 0 : i32
    return %c0_i32, %c0_i32_0 : i32, i32
  }
  func.func @transform_12(%arg0: i32) -> (i32, i32) {
    %c0_i32 = arith.constant 0 : i32
    %c0_i32_0 = arith.constant 0 : i32
    %c0_i32_1 = arith.constant 0 : i32
    return %c0_i32, %c0_i32_0 : i32, i32
  }
  func.func @transform_13(%arg0: i32) -> (i32, i32) {
    %c0_i32 = arith.constant 0 : i32
    %c0_i32_0 = arith.constant 0 : i32
    %c0_i32_1 = arith.constant 0 : i32
    return %c0_i32, %c0_i32_0 : i32, i32
  }
  func.func @transform_14(%arg0: i32) -> (i32, i32) {
    %c0_i32 = arith.constant 0 : i32
    %c0_i32_0 = arith.constant 0 : i32
    %c0_i32_1 = arith.constant 0 : i32
    return %c0_i32, %c0_i32_0 : i32, i32
  }
  func.func @transform_15(%arg0: i32) -> (i32, i32) {
    %c0_i32 = arith.constant 0 : i32
    %c0_i32_0 = arith.constant 0 : i32
    %c0_i32_1 = arith.constant 0 : i32
    return %c0_i32, %c0_i32_0 : i32, i32
  }
  func.func @transform_16(%arg0: i32) -> (i32, i32) {
    %c0_i32 = arith.constant 0 : i32
    %c0_i32_0 = arith.constant 0 : i32
    %c0_i32_1 = arith.constant 0 : i32
    return %c0_i32, %c0_i32_0 : i32, i32
  }
  func.func @transform_17(%arg0: i32) -> (i32, i32) {
    %c0_i32 = arith.constant 0 : i32
    %c0_i32_0 = arith.constant 0 : i32
    %c0_i32_1 = arith.constant 0 : i32
    return %c0_i32, %c0_i32_0 : i32, i32
  }
  func.func @transform_18(%arg0: i32) -> (i32, i32) {
    %c0_i32 = arith.constant 0 : i32
    %c0_i32_0 = arith.constant 0 : i32
    %c0_i32_1 = arith.constant 0 : i32
    return %c0_i32, %c0_i32_0 : i32, i32
  }
  func.func @transform_19(%arg0: i32) -> (i32, i32) {
    %c0_i32 = arith.constant 0 : i32
    %c0_i32_0 = arith.constant 0 : i32
    %c0_i32_1 = arith.constant 0 : i32
    return %c0_i32, %c0_i32_0 : i32, i32
  }
  func.func @transform_20(%arg0: i32) -> (i32, i32) {
    %c0_i32 = arith.constant 0 : i32
    %c0_i32_0 = arith.constant 0 : i32
    %c0_i32_1 = arith.constant 0 : i32
    return %c0_i32, %c0_i32_0 : i32, i32
  }
  func.func @transform_21(%arg0: i32) -> (i32, i32) {
    %c0_i32 = arith.constant 0 : i32
    %c0_i32_0 = arith.constant 0 : i32
    return %arg0, %c0_i32 : i32, i32
  }
  func.func @transform_22(%arg0: i32) -> (i32, i32) {
    %c0_i32 = arith.constant 0 : i32
    %c0_i32_0 = arith.constant 0 : i32
    return %arg0, %c0_i32 : i32, i32
  }
}

</mosaic_0001>

<bundles_post_ra>
// kernel: byol_forward.1
= control target key start
LH: loop header
LB: loop body
LE: loop exit
PB: predicated region body
PF: predicated region fallthrough
CT: control target
= control target key end

     0   :  { %s2511_s0 = inlined_call_operand.vmem [shape: bf16[16,128], index: 0, kind: input, shape index: {}]   ;;  %s2512_s1 = inlined_call_operand.vmem [shape: bf16[128,256], index: 1, kind: input, shape index: {}]   ;;  %s2513_s2 = inlined_call_operand.vmem [shape: f32[1,256], index: 2, kind: input, shape index: {}]   ;;  %s2514_s3 = inlined_call_operand.vmem [shape: bf16[128,128], index: 3, kind: input, shape index: {}]   ;;  %s2515_s4 = inlined_call_operand.vmem [shape: f32[1,128], index: 4, kind: input, shape index: {}]   ;;  %s2516_s5 = inlined_call_operand.vmem [shape: f32[1,128], index: 5, kind: input, shape index: {}]   ;;  %s2517_s6 = inlined_call_operand.vmem [shape: f32[1,128], index: 6, kind: input, shape index: {}]   ;;  %s2518_s7 = inlined_call_operand.vmem [shape: bf16[128,128], index: 7, kind: input, shape index: {}]   ;;  %s2519_s8 = inlined_call_operand.vmem [shape: f32[1,128], index: 8, kind: input, shape index: {}]   ;;  %s2520_s9 = inlined_call_operand.vmem [shape: bf16[128,128], index: 9, kind: input, shape index: {}]   ;;  %s2521_s10 = inlined_call_operand.vmem [shape: f32[1,128], index: 10, kind: input, shape index: {}]   ;;  %s2522_s11 = inlined_call_operand.vmem [shape: f32[1,128], index: 11, kind: input, shape index: {}]   ;;  %s2523_s12 = inlined_call_operand.vmem [shape: f32[1,128], index: 12, kind: input, shape index: {}]   ;;  %s2524_s13 = inlined_call_operand.vmem [shape: bf16[128,128], index: 13, kind: input, shape index: {}]   ;;  %s2525_s14 = inlined_call_operand.vmem [shape: f32[1,128], index: 14, kind: input, shape index: {}]   ;;  %s2526_s15 = inlined_call_operand.vmem [shape: bf16[128,128], index: 15, kind: input, shape index: {}]   ;;  %s2527_s16 = inlined_call_operand.vmem [shape: f32[1,128], index: 16, kind: input, shape index: {}]   ;;  %s2528_s17 = inlined_call_operand.vmem [shape: f32[1,128], index: 17, kind: input, shape index: {}]   ;;  %s2529_s18 = inlined_call_operand.vmem [shape: f32[1,128], index: 18, kind: input, shape index: {}]   ;;  %s2530_s19 = inlined_call_operand.vmem [shape: bf16[128,128], index: 19, kind: input, shape index: {}]   ;;  %s2531_s20 = inlined_call_operand.vmem [shape: f32[1,128], index: 20, kind: input, shape index: {}]   ;;  %s2532_s21 = inlined_call_operand.vmem [shape: f32[16,128], index: 21, kind: output, shape index: {0}]   ;;  %s2533_s22 = inlined_call_operand.vmem [shape: f32[16,128], index: 22, kind: output, shape index: {1}]  }
   0x1   :  { %2536 = sst [smem:[#allocation2_spill]] %s2511_s0 }
   0x2   :  { %2537 = sst [smem:[#allocation3_spill]] %s2512_s1 }
   0x3   :  { %2538 = sst [smem:[#allocation4_spill]] %s2513_s2 }
   0x4   :  { %2539 = sst [smem:[#allocation5_spill]] %s2514_s3  ;;  %s2192_s3 = smov 0  }
   0x5   :  { %2540 = sst [smem:[#allocation6_spill]] %s2515_s4 }
   0x6   :  { %2541 = sst [smem:[#allocation7_spill]] %s2516_s5 }
   0x7   :  { %2542 = sst [smem:[#allocation8_spill]] %s2517_s6 }
   0x8 LB: > { %s1717_s28 = sadd.s32 4294967295, %s2072_s3   ;;  %p1721_p0 = scmp.ge.s32.totalorder %s2072_s3, 1  ;;  %s2072_s3 = sphi %s2192_s3, %s33_s3  }
   0x9   : > { %p614_p1 = scmp.lt.s32.totalorder %s2072_s3, 3 }
   0xb   : > { %p615_p2 = pnand %p1721_p0, %p614_p1 }
   0xc   : > { %s2543_s4 = sld [smem:[#allocation3_spill]] (!%p615_p2)  ;;  %v2074_v2 = vmov (!%p615_p2), 0   ;;  %v2075_v4 = vmov (!%p615_p2), 0.0   ;;  %p678_p3 = scmp.lt.s32.totalorder (!%p615_p2), %s1717_s28, 1  ;;  %v2012_v10 = vld [vmem:[%s2520_s9] sm:$0xff] (!%p615_p2)   ;;  %v2013_v12 = vld [vmem:[%s2520_s9 + $0x8] sm:$0xff] (!%p615_p2)   ;;  %v710_v27 = vlaneseq (!%p615_p2) }
   0xd   : > { %618 = sbr.rel (%p615_p2) target bundleno = 1245 (0x4dd), region = 104  ;;  %832 = vmatprep.mubr.bf16.mxu0 (!%p615_p2), %v2074_v2  ;;  %1857 = vmatprep.subr.bf16.mxu1 (!%p615_p2), %v2075_v4  ;;  %v2014_v16 = vld [vmem:[%s2520_s9 + $0x10] sm:$0xff] (!%p615_p2)   ;;  %v2015_v18 = vld [vmem:[%s2520_s9 + $0x18] sm:$0xff] (!%p615_p2)   ;;  %v2016_v21 = vld [vmem:[%s2520_s9 + $0x20] sm:$0xff] (!%p615_p2)   ;;  %s2544_s2 = sld [smem:[#allocation2_spill]] (!%p615_p2)  ;;  %vm2076_vm0 = vmmov (!%p615_p2), 0  }
   0xe   : > { %1858 = vmatpush3.bf16.msra.mxu1 (!%p615_p2), %v2012_v10  ;;  %v2017_v23 = vld [vmem:[%s2520_s9 + $0x28] sm:$0xff] (!%p615_p2)   ;;  %v2018_v25 = vld [vmem:[%s2520_s9 + $0x30] sm:$0xff] (!%p615_p2)   ;;  %v2019_v26 = vld [vmem:[%s2520_s9 + $0x38] sm:$0xff] (!%p615_p2)   ;;  %1873 = vmatprep.mubr.msk.bf16.mxu1 (!%p615_p2), %vm2076_vm0, %v2075_v4  ;;  %v711_v28 = vshrl.u32 (!%p615_p2), %v710_v27, 7  ;;  %s2545_s25 = sld [smem:[#allocation4_spill]] (!%p615_p2)  ;;  %s2547_s30 = sld [smem:[#allocation6_spill]] (!%p615_p2) }
   0xf   : > { %1859 = vmatprep.subr.bf16.mxu1 (!%p615_p2), %v2075_v4  ;;  %v2028_v50 = vld [vmem:[%s2524_s13] sm:$0xff] (!%p615_p2)   ;;  %v2029_v51 = vld [vmem:[%s2524_s13 + $0x8] sm:$0xff] (!%p615_p2)   ;;  %v2030_v52 = vld [vmem:[%s2524_s13 + $0x10] sm:$0xff] (!%p615_p2)   ;;  %s2548_s29 = sld [smem:[#allocation7_spill]] (!%p615_p2)  ;;  %s2549_s23 = sld [smem:[#allocation8_spill]] (!%p615_p2) }
  0x10   : > { %v716_v29 = vsub.s32 (!%p615_p2), 1, %v711_v28  ;;  %v712_v44 = vsub.s32 (!%p615_p2), 0, %v711_v28  ;;  %v2031_v53 = vld [vmem:[%s2524_s13 + $0x18] sm:$0xff] (!%p615_p2)   ;;  %v2032_v54 = vld [vmem:[%s2524_s13 + $0x20] sm:$0xff] (!%p615_p2)   ;;  %v2033_v55 = vld [vmem:[%s2524_s13 + $0x28] sm:$0xff] (!%p615_p2)  }
  0x11   : > { %v2034_v56 = vld [vmem:[%s2524_s13 + $0x30] sm:$0xff] (!%p615_p2)   ;;  %v2035_v57 = vld [vmem:[%s2524_s13 + $0x38] sm:$0xff] (!%p615_p2)   ;;  %v1741_v58 = vld [vmem:[%s2521_s10] ss:$0 sm:$0xff] (!%p615_p2) }
  0x12   : > { %v1988_v0 = vld [vmem:[%s2543_s4 + $0x4] ss:$8 sps:$4 sm:$0xff] (!%p615_p2)   ;;  %v1990_v1 = vld [vmem:[%s2543_s4] ss:$8 sps:$4 sm:$0xff] (!%p615_p2)   ;;  %v1991_v3 = vld [vmem:[%s2543_s4 + $0x14] ss:$8 sps:$4 sm:$0xff] (!%p615_p2)   ;;  %1860 = vmatpush3.bf16.msra.mxu1 (!%p615_p2), %v2013_v12 }
  0x13   : > { %800 = vmatprep.subr.bf16.mxu0 (!%p615_p2), %v1988_v0  ;;  %v1993_v5 = vld [vmem:[%s2543_s4 + $0x10] ss:$8 sps:$4 sm:$0xff] (!%p615_p2)   ;;  %v1994_v6 = vld [vmem:[%s2543_s4 + $0x24] ss:$8 sps:$4 sm:$0xff] (!%p615_p2)   ;;  %v1996_v7 = vld [vmem:[%s2543_s4 + $0x20] ss:$8 sps:$4 sm:$0xff] (!%p615_p2)   ;;  %1861 = vmatprep.subr.bf16.mxu1 (!%p615_p2), %v2075_v4 }
  0x14   : > { %801 = vmatpush1.bf16.msra.mxu0 %v1990_v1  ;;  %v1997_v8 = vld [vmem:[%s2543_s4 + $0x34] ss:$8 sps:$4 sm:$0xff]   ;;  %v1999_v9 = vld [vmem:[%s2543_s4 + $0x30] ss:$8 sps:$4 sm:$0xff]   ;;  %v2000_v11 = vld [vmem:[%s2543_s4 + $0x44] ss:$8 sps:$4 sm:$0xff]  }
  0x15   : > { %802 = vmatprep.subr.bf16.mxu0 %v1991_v3  ;;  %s2551_s28 = smov (!%p678_p3, %s1717_s28), 1  ;;  %v2002_v13 = vld [vmem:[%s2543_s4 + $0x40] ss:$8 sps:$4 sm:$0xff]   ;;  %v2003_v14 = vld [vmem:[%s2543_s4 + $0x54] ss:$8 sps:$4 sm:$0xff]  }
  0x16   : > { %v2005_v15 = vld [vmem:[%s2543_s4 + $0x50] ss:$8 sps:$4 sm:$0xff]   ;;  %s1722_s1 = sshll.u32 %s2551_s28, 2  ;;  %v2006_v17 = vld [vmem:[%s2543_s4 + $0x64] ss:$8 sps:$4 sm:$0xff]   ;;  %1862 = vmatpush3.bf16.msra.mxu1 %v2014_v16 }
  0x17   : > { %v2008_v19 = vld [vmem:[%s2543_s4 + $0x60] ss:$8 sps:$4 sm:$0xff]   ;;  %v2009_v20 = vld [vmem:[%s2543_s4 + $0x74] ss:$8 sps:$4 sm:$0xff]   ;;  %1863 = vmatprep.subr.bf16.mxu1 %v2075_v4  ;;  %v2011_v22 = vld [vmem:[%s2543_s4 + $0x70] ss:$8 sps:$4 sm:$0xff]   ;;  %s681_s27 = scalar_lea.vmem %s2544_s2, %s1722_s1 }
  0x18   : > { %803 = vmatpush1.bf16.msra.mxu0 %v1993_v5  ;;  %v691_v24 = vld [vmem:[%s681_s27] sm:$0xf]  ;;  %s2546_s27 = sld [smem:[#allocation5_spill]] }
  0x19   : > { %804 = vmatprep.subr.bf16.mxu0 %v1994_v6  ;;  %v708_v30 = vld [vmem:[%s2545_s25] sm:$0x3] }
  0x1a   : > { %1864 = vmatpush3.bf16.msra.mxu1 %v2015_v18  ;;  %v717_v31 = vrot.slane %v708_v30, %v716_v29  ;;  %v713_v46 = vrot.slane %v708_v30, %v712_v44  ;;  %v1750_v30 = vld [vmem:[%s2522_s11] ss:$0 sm:$0xff] }
  0x1b   : > { %1865 = vmatprep.subr.bf16.mxu1 %v2075_v4  ;;  %v2036_v44 = vld [vmem:[%s2518_s7] sm:$0xff]  }
  0x1c   : > { %805 = vmatpush1.bf16.msra.mxu0 %v1996_v7 }
  0x1d   : > { %806 = vmatprep.subr.bf16.mxu0 %v1997_v8 }
  0x1e   : > { %1866 = vmatpush3.bf16.msra.mxu1 %v2016_v21  ;;  %v2020_v37 = vld [vmem:[%s2546_s27] sm:$0xff]   ;;  %v2021_v39 = vld [vmem:[%s2546_s27 + $0x8] sm:$0xff]   ;;  %v2022_v40 = vld [vmem:[%s2546_s27 + $0x10] sm:$0xff]  }
  0x1f   : > { %1867 = vmatprep.subr.bf16.mxu1 %v2075_v4  ;;  %v2023_v41 = vld [vmem:[%s2546_s27 + $0x18] sm:$0xff]   ;;  %v2024_v42 = vld [vmem:[%s2546_s27 + $0x20] sm:$0xff]   ;;  %v2025_v43 = vld [vmem:[%s2546_s27 + $0x28] sm:$0xff]  }
  0x20   : > { %807 = vmatpush1.bf16.msra.mxu0 %v1999_v9  ;;  %v2026_v45 = vld [vmem:[%s2546_s27 + $0x30] sm:$0xff]   ;;  %v2027_v47 = vld [vmem:[%s2546_s27 + $0x38] sm:$0xff]  }
  0x21   : > { %808 = vmatprep.subr.bf16.mxu0 %v2000_v11 }
  0x22   : > { %1868 = vmatpush3.bf16.msra.mxu1 %v2017_v23 }
  0x23   : > { %1869 = vmatprep.subr.bf16.mxu1 %v2075_v4 }
  0x24   : > { %809 = vmatpush1.bf16.msra.mxu0 %v2002_v13 }
  0x25   : > { %810 = vmatprep.subr.bf16.mxu0 %v2003_v14 }
  0x26   : > { %1870 = vmatpush3.bf16.msra.mxu1 %v2018_v25 }
  0x27   : > { %1871 = vmatprep.subr.bf16.mxu1 %v2075_v4 }
  0x28   : > { %811 = vmatpush1.bf16.msra.mxu0 %v2005_v15 }
  0x29   : > { %812 = vmatprep.subr.bf16.mxu0 %v2006_v17 }
  0x2a   : > { %1872 = vmatpush3.bf16.msra.mxu1 %v2019_v26 }
  0x2b   : > { %1897 = vmatprep.subr.bf16.mxu1 %v2075_v4 }
  0x2c   : > { %813 = vmatpush1.bf16.msra.mxu0 %v2008_v19 }
  0x2d   : > { %814 = vmatprep.subr.bf16.mxu0 %v2009_v20  ;;  %v1761_v20 = vld [vmem:[%s2547_s30] ss:$0 sm:$0xff] }
  0x30   : > { %815 = vmatpush1.bf16.msra.mxu0 %v2011_v22 }
  0x31   : > { %1877 = vmatprep.subr.bf16.mxu0 %v2075_v4 }
  0x33   : > { %833 = vmatmul.mubr.bf16.vlgmr.msra.gmra.mrb[0].mxu0 %v691_v24 }
  0x34   : > { %1893 = vmatprep.mubr.msk.bf16.mxu0 %vm2076_vm0, %v2075_v4  ;;  %1878 = vmatpush3.bf16.msra.mxu0 %v2028_v50  ;;  %v2037_v50 = vld [vmem:[%s2518_s7 + $0x8] sm:$0xff]  }
  0x35   : > { %1879 = vmatprep.subr.bf16.mxu0 %v2075_v4 }
  0x38   : > { %1880 = vmatpush3.bf16.msra.mxu0 %v2029_v51 }
  0x39   : > { %1881 = vmatprep.subr.bf16.mxu0 %v2075_v4 }
  0x3c   : > { %1882 = vmatpush3.bf16.msra.mxu0 %v2030_v52 }
  0x3d   : > { %1883 = vmatprep.subr.bf16.mxu0 %v2075_v4 }
  0x40   : > { %1884 = vmatpush3.bf16.msra.mxu0 %v2031_v53 }
  0x41   : > { %1885 = vmatprep.subr.bf16.mxu0 %v2075_v4 }
  0x44   : > { %1886 = vmatpush3.bf16.msra.mxu0 %v2032_v54  ;;  %v2038_v54 = vld [vmem:[%s2518_s7 + $0x10] sm:$0xff]  }
  0x45   : > { %1887 = vmatprep.subr.bf16.mxu0 %v2075_v4 }
  0x48   : > { %1888 = vmatpush3.bf16.msra.mxu0 %v2033_v55 }
  0x49   : > { %1889 = vmatprep.subr.bf16.mxu0 %v2075_v4 }
  0x4c   : > { %1890 = vmatpush3.bf16.msra.mxu0 %v2034_v56 }
  0x4d   : > { %1891 = vmatprep.subr.bf16.mxu0 %v2075_v4 }
  0x50   : > { %1892 = vmatpush3.bf16.msra.mxu0 %v2035_v57  ;;  %v2039_v57 = vld [vmem:[%s2518_s7 + $0x18] sm:$0xff]  }
  0x51   : > { %1917 = vmatprep.subr.bf16.mxu0 %v2075_v4 }
 0x106   : > { %v834_v32 = vpop.f32.mrb[0].mxu0 }
 0x107   : > { %v836_v33 = vpop.f32.mrb[1].mxu0  ;;  %v835_v48 = vadd.f32 %v834_v32, %v713_v46 }
 0x108   : > { %v837_v34 = vadd.f32 %v836_v33, %v717_v31  ;;  %v838_v35 = vpop.f32.mrb[2].mxu0 }
 0x109   : > { %v839_v36 = vpop.f32.mrb[3].mxu0  ;;  %v1106_v49 = vpack.c.bf16 %v835_v48, %v835_v48 }
 0x10a   : > { %v841_v38 = vpack.c.bf16 %v837_v34, %v837_v34  ;;  %v1751_v34 = vld [vmem:[%s2523_s12] ss:$0 sm:$0xff] }
 0x10c   : > { %1874 = vmatmul.mubr.bf16.vlgmr.msra.gmra.mrb[0].mxu1 %v841_v38 }
 0x10d   : > { %1898 = vmatpush3.bf16.msra.mxu1 %v2020_v37  ;;  %1913 = vmatprep.mubr.msk.bf16.mxu1 %vm2076_vm0, %v2075_v4 }
 0x10e   : > { %1899 = vmatprep.subr.bf16.mxu1 %v2075_v4 }
 0x111   : > { %1900 = vmatpush3.bf16.msra.mxu1 %v2021_v39 }
 0x112   : > { %1901 = vmatprep.subr.bf16.mxu1 %v2075_v4 }
 0x115   : > { %1902 = vmatpush3.bf16.msra.mxu1 %v2022_v40 }
 0x116   : > { %1903 = vmatprep.subr.bf16.mxu1 %v2075_v4 }
 0x119   : > { %1904 = vmatpush3.bf16.msra.mxu1 %v2023_v41 }
 0x11a   : > { %1905 = vmatprep.subr.bf16.mxu1 %v2075_v4 }
 0x11d   : > { %1906 = vmatpush3.bf16.msra.mxu1 %v2024_v42 }
 0x11e   : > { %1907 = vmatprep.subr.bf16.mxu1 %v2075_v4 }
 0x121   : > { %1908 = vmatpush3.bf16.msra.mxu1 %v2025_v43 }
 0x122   : > { %1909 = vmatprep.subr.bf16.mxu1 %v2075_v4 }
 0x125   : > { %1910 = vmatpush3.bf16.msra.mxu1 %v2026_v45 }
 0x126   : > { %1911 = vmatprep.subr.bf16.mxu1 %v2075_v4 }
 0x129   : > { %1912 = vmatpush3.bf16.msra.mxu1 %v2027_v47 }
 0x12a   : > { %1937 = vmatprep.subr.bf16.mxu1 %v2075_v4 }
 0x12c   : > { %1914 = vmatmul.mubr.bf16.vlgmr.msra.gmra.mrb[4].mxu1 %v1106_v49 }
 0x12d   : > { %1953 = vmatprep.mubr.msk.bf16.mxu1 %vm2076_vm0, %v2075_v4 }
 0x1df   : > { %v947_v59 = vpop.f32.mrb[0].mxu1 }
 0x1e0   : > { %v948_v60 = vadd.f32 %v1741_v58, %v947_v59  ;;  %v1875_v61 = vpop.f32.mrb[1].mxu1  ;;  %v2040_v58 = vld [vmem:[%s2518_s7 + $0x20] sm:$0xff]   ;;  %v2041_v59 = vld [vmem:[%s2518_s7 + $0x28] sm:$0xff]  }
 0x1e1   : > { %v950_v62 = vpop.f32.mrb[2].mxu1 }
 0x1e2   : > { %v953_v63 = vrot.slane %v948_v60, 4  ;;  %v961_v0 = vmul.f32 %v948_v60, %v948_v60  ;;  %v1876_v1 = vpop.f32.mrb[3].mxu1  ;;  %v2042_v62 = vld [vmem:[%s2518_s7 + $0x30] sm:$0xff]  }
 0x1e3   : > { %v1771_v1 = vld [vmem:[%s2549_s23] ss:$0 sm:$0xff] }
 0x1e4   : > { %v954_v2 = vadd.f32 %v953_v63, %v948_v60  ;;  %v962_v3 = vrot.slane %v961_v0, 4  ;;  %v1770_v63 = vld [vmem:[%s2548_s29] ss:$0 sm:$0xff]  ;;  %s1723_s29 = sshll.u32 %s2551_s28, 3 }
 0x1e5   : > { %s685_s5 = scalar_lea.vmem %s2532_s21, %s1723_s29  ;;  %s689_s1 = scalar_lea.vmem %s2533_s22, %s1723_s29 }
 0x1e6   : > { %v955_v5 = vrot.slane %v954_v2, 2  ;;  %v963_v6 = vadd.f32 %v962_v3, %v961_v0  ;;  %v2043_v3 = vld [vmem:[%s2518_s7 + $0x38] sm:$0xff]  }
 0x1e8   : > { %v956_v7 = vadd.f32 %v955_v5, %v954_v2  ;;  %v964_v8 = vrot.slane %v963_v6, 2 }
 0x1ea   : > { %v957_v9 = vrot.slane %v956_v7, 1  ;;  %v965_v10 = vadd.f32 %v964_v8, %v963_v6  ;;  %v2044_v8 = vld [vmem:[%s2526_s15] sm:$0xff]  }
 0x1eb   : > { %1938 = vmatpush3.bf16.msra.mxu1 %v2044_v8 }
 0x1ec   : > { %v958_v11 = vadd.f32 %v957_v9, %v956_v7  ;;  %v966_v12 = vrot.slane %v965_v10, 1  ;;  %v2045_v9 = vld [vmem:[%s2526_s15 + $0x8] sm:$0xff]   ;;  %1939 = vmatprep.subr.bf16.mxu1 %v2075_v4 }
 0x1ee   : > { %v960_v13 = vmul.f32 0.125, %v958_v11  ;;  %v967_v14 = vadd.f32 %v966_v12, %v965_v10  ;;  %v2046_v10 = vld [vmem:[%s2526_s15 + $0x10] sm:$0xff]   ;;  %v2047_v11 = vld [vmem:[%s2526_s15 + $0x18] sm:$0xff]   ;;  %v2048_v12 = vld [vmem:[%s2526_s15 + $0x20] sm:$0xff]  }
 0x1ef   : > { %1940 = vmatpush3.bf16.msra.mxu1 %v2045_v9 }
 0x1f0   : > { %v968_v15 = vmul.f32 0.125, %v967_v14  ;;  %v969_v16 = vmul.f32 %v960_v13, %v960_v13  ;;  %v972_v24 = vsub.f32 %v948_v60, %v960_v13  ;;  %1941 = vmatprep.subr.bf16.mxu1 %v2075_v4  ;;  %v2049_v13 = vld [vmem:[%s2526_s15 + $0x28] sm:$0xff]   ;;  %v2050_v14 = vld [vmem:[%s2526_s15 + $0x30] sm:$0xff]  }
 0x1f2   : > { %v970_v17 = vsub.f32 %v968_v15, %v969_v16  ;;  %v2051_v15 = vld [vmem:[%s2526_s15 + $0x38] sm:$0xff]   ;;  %v1752_v16 = vld [vmem:[%s2525_s14] ss:$0 sm:$0xff] }
 0x1f3   : > { %1942 = vmatpush3.bf16.msra.mxu1 %v2046_v10 }
 0x1f4   : > { %v971_v18 = vmax.f32 %v970_v17, 0.0  ;;  %1943 = vmatprep.subr.bf16.mxu1 %v2075_v4 }
 0x1f6   : > { %v973_v19 = vadd.f32 1e-05, %v971_v18 }
 0x1f7   : > { %1944 = vmatpush3.bf16.msra.mxu1 %v2047_v11 }
 0x1f8   : > { %2060 = vrsqrt.f32 %v973_v19  ;;  %1945 = vmatprep.subr.bf16.mxu1 %v2075_v4 }
 0x1fb   : > { %1946 = vmatpush3.bf16.msra.mxu1 %v2048_v12 }
 0x1fc   : > { %1947 = vmatprep.subr.bf16.mxu1 %v2075_v4 }
 0x1ff   : > { %v1212_v21 = vpop.f32.mrb[4].mxu1  ;;  %1948 = vmatpush3.bf16.msra.mxu1 %v2049_v13 }
 0x200   : > { %v1213_v22 = vadd.f32 %v1761_v20, %v1212_v21  ;;  %v1915_v23 = vpop.f32.mrb[5].mxu1  ;;  %1949 = vmatprep.subr.bf16.mxu1 %v2075_v4 }
 0x201   : > { %v1215_v25 = vpop.f32.mrb[6].mxu1 }
 0x202   : > { %v2061_v26 = vpop.eup %2060  ;;  %v1218_v27 = vrot.slane %v1213_v22, 4  ;;  %v1225_v28 = vmul.f32 %v1213_v22, %v1213_v22  ;;  %v1916_v29 = vpop.f32.mrb[7].mxu1 }
 0x203   : > { %v975_v31 = vmul.f32 %v2061_v26, %v972_v24  ;;  %1950 = vmatpush3.bf16.msra.mxu1 %v2050_v14  ;;  %v2052_v29 = vld [vmem:[%s2530_s19] sm:$0xff]  }
 0x204   : > { %v1219_v32 = vadd.f32 %v1218_v27, %v1213_v22  ;;  %v1226_v33 = vrot.slane %v1225_v28, 4  ;;  %1951 = vmatprep.subr.bf16.mxu1 %v2075_v4 }
 0x205   : > { %v983_v35 = vmul.f32 %v1750_v30, %v975_v31  ;;  %v2053_v30 = vld [vmem:[%s2530_s19 + $0x8] sm:$0xff]   ;;  %v2054_v31 = vld [vmem:[%s2530_s19 + $0x10] sm:$0xff]  }
 0x206   : > { %v1220_v36 = vrot.slane %v1219_v32, 2  ;;  %v1227_v37 = vadd.f32 %v1226_v33, %v1225_v28  ;;  %v2056_v33 = vld [vmem:[%s2530_s19 + $0x20] sm:$0xff]  }
 0x207   : > { %v991_v38 = vadd.f32 %v1751_v34, %v983_v35  ;;  %1952 = vmatpush3.bf16.msra.mxu1 %v2051_v15  ;;  %v2057_v34 = vld [vmem:[%s2530_s19 + $0x28] sm:$0xff]   ;;  %v2058_v35 = vld [vmem:[%s2530_s19 + $0x30] sm:$0xff]  }
 0x208   : > { %v1221_v39 = vadd.f32 %v1220_v36, %v1219_v32  ;;  %v1228_v40 = vrot.slane %v1227_v37, 2  ;;  %v2055_v32 = vld [vmem:[%s2530_s19 + $0x18] sm:$0xff]  }
 0x209   : > { %v992_v41 = vmax.f32 %v991_v38, 0.0  ;;  %v2059_v36 = vld [vmem:[%s2530_s19 + $0x38] sm:$0xff]  }
 0x20a   : > { %v1222_v42 = vrot.slane %v1221_v39, 1  ;;  %v1229_v43 = vadd.f32 %v1228_v40, %v1227_v37  ;;  %v1781_v37 = vld [vmem:[%s2527_s16] ss:$0 sm:$0xff] }
 0x20b   : > { %v993_v45 = vpack.c.bf16 %v992_v41, %v992_v41 }
 0x20c   : > { %v1223_v46 = vadd.f32 %v1222_v42, %v1221_v39  ;;  %v1230_v47 = vrot.slane %v1229_v43, 1 }
 0x20d   : > { %1894 = vmatmul.mubr.bf16.vlgmr.msra.gmra.mrb[4].mxu0 %v993_v45 }
 0x20e   : > { %v1224_v48 = vmul.f32 0.125, %v1223_v46  ;;  %v1231_v49 = vadd.f32 %v1230_v47, %v1229_v43  ;;  %1918 = vmatpush3.bf16.msra.mxu0 %v2036_v44  ;;  %1933 = vmatprep.mubr.msk.bf16.mxu0 %vm2076_vm0, %v2075_v4 }
 0x20f   : > { %1919 = vmatprep.subr.bf16.mxu0 %v2075_v4 }
 0x210   : > { %v1232_v51 = vmul.f32 0.125, %v1231_v49  ;;  %v1233_v52 = vmul.f32 %v1224_v48, %v1224_v48  ;;  %v1236_v60 = vsub.f32 %v1213_v22, %v1224_v48  ;;  %v1772_v22 = vld [vmem:[%s2519_s8] ss:$0 sm:$0xff] }
 0x212   : > { %v1234_v53 = vsub.f32 %v1232_v51, %v1233_v52  ;;  %1920 = vmatpush3.bf16.msra.mxu0 %v2037_v50 }
 0x213   : > { %1921 = vmatprep.subr.bf16.mxu0 %v2075_v4 }
 0x214   : > { %v1235_v55 = vmax.f32 %v1234_v53, 0.0 }
 0x216   : > { %v1237_v56 = vadd.f32 1e-05, %v1235_v55  ;;  %1922 = vmatpush3.bf16.msra.mxu0 %v2038_v54 }
 0x217   : > { %1923 = vmatprep.subr.bf16.mxu0 %v2075_v4 }
 0x218   : > { %2062 = vrsqrt.f32 %v1237_v56 }
 0x21a   : > { %1924 = vmatpush3.bf16.msra.mxu0 %v2039_v57 }
 0x21b   : > { %1925 = vmatprep.subr.bf16.mxu0 %v2075_v4 }
 0x21e   : > { %1926 = vmatpush3.bf16.msra.mxu0 %v2040_v58 }
 0x21f   : > { %1927 = vmatprep.subr.bf16.mxu0 %v2075_v4 }
 0x222   : > { %v2063_v61 = vpop.eup %2062  ;;  %1928 = vmatpush3.bf16.msra.mxu0 %v2041_v59 }
 0x223   : > { %v1239_v0 = vmul.f32 %v2063_v61, %v1236_v60  ;;  %1929 = vmatprep.subr.bf16.mxu0 %v2075_v4 }
 0x225   : > { %v1247_v2 = vmul.f32 %v1770_v63, %v1239_v0  ;;  %v1790_v63 = vld [vmem:[%s2528_s17] ss:$0 sm:$0xff] }
 0x226   : > { %1930 = vmatpush3.bf16.msra.mxu0 %v2042_v62 }
 0x227   : > { %1931 = vmatprep.subr.bf16.mxu0 %v2075_v4  ;;  %v1255_v5 = vadd.f32 %v1771_v1, %v1247_v2  ;;  %v1791_v1 = vld [vmem:[%s2529_s18] ss:$0 sm:$0xff] }
 0x229   : > { %v1256_v6 = vmax.f32 %v1255_v5, 0.0 }
 0x22a   : > { %1932 = vmatpush3.bf16.msra.mxu0 %v2043_v3 }
 0x22b   : > { %v1257_v7 = vpack.c.bf16 %v1256_v6, %v1256_v6  ;;  %1957 = vmatprep.subr.bf16.mxu0 %v2075_v4 }
 0x22d   : > { %1934 = vmatmul.mubr.bf16.vlgmr.msra.gmra.mrb[8].mxu0 %v1257_v7  ;;  %v1792_v7 = vld [vmem:[%s2531_s20] ss:$0 sm:$0xff] }
 0x22e   : > { %1973 = vmatprep.mubr.msk.bf16.mxu0 %vm2076_vm0, %v2075_v4  ;;  %1958 = vmatpush3.bf16.msra.mxu0 %v2052_v29 }
 0x22f   : > { %1959 = vmatprep.subr.bf16.mxu0 %v2075_v4 }
 0x232   : > { %1960 = vmatpush3.bf16.msra.mxu0 %v2053_v30 }
 0x233   : > { %1961 = vmatprep.subr.bf16.mxu0 %v2075_v4 }
 0x236   : > { %1962 = vmatpush3.bf16.msra.mxu0 %v2054_v31 }
 0x237   : > { %1963 = vmatprep.subr.bf16.mxu0 %v2075_v4 }
 0x23a   : > { %1964 = vmatpush3.bf16.msra.mxu0 %v2055_v32 }
 0x23b   : > { %1965 = vmatprep.subr.bf16.mxu0 %v2075_v4 }
 0x23e   : > { %1966 = vmatpush3.bf16.msra.mxu0 %v2056_v33 }
 0x23f   : > { %1967 = vmatprep.subr.bf16.mxu0 %v2075_v4 }
 0x242   : > { %1968 = vmatpush3.bf16.msra.mxu0 %v2057_v34 }
 0x243   : > { %1969 = vmatprep.subr.bf16.mxu0 %v2075_v4 }
 0x246   : > { %1970 = vmatpush3.bf16.msra.mxu0 %v2058_v35 }
 0x247   : > { %1971 = vmatprep.subr.bf16.mxu0 %v2075_v4 }
 0x24a   : > { %1972 = vmatpush3.bf16.msra.mxu0 %v2059_v36 }
 0x2e0   : > { %v1099_v17 = vpop.f32.mrb[4].mxu0 }
 0x2e1   : > { %v1100_v18 = vadd.f32 %v1752_v16, %v1099_v17  ;;  %v1895_v19 = vpop.f32.mrb[5].mxu0 }
 0x2e2   : > { %v1102_v20 = vpop.f32.mrb[6].mxu0 }
 0x2e3   : > { %1105 = vst [vmem:[%s685_s5] sm:$0xff] %v1100_v18  ;;  %v1896_v21 = vpop.f32.mrb[7].mxu0 }
 0x300   : > { %v1363_v23 = vpop.f32.mrb[8].mxu0 }
 0x301   : > { %v1364_v24 = vadd.f32 %v1772_v22, %v1363_v23  ;;  %v1935_v25 = vpop.f32.mrb[9].mxu0 }
 0x302   : > { %v1366_v26 = vpop.f32.mrb[10].mxu0 }
 0x303   : > { %v1369_v27 = vpack.c.bf16 %v1364_v24, %v1364_v24  ;;  %v1936_v28 = vpop.f32.mrb[11].mxu0 }
 0x305   : > { %1954 = vmatmul.mubr.bf16.vlgmr.msra.gmra.mrb[8].mxu1 %v1369_v27 }
 0x3d8   : > { %v1475_v38 = vpop.f32.mrb[8].mxu1 }
 0x3d9   : > { %v1476_v39 = vadd.f32 %v1781_v37, %v1475_v38  ;;  %v1955_v40 = vpop.f32.mrb[9].mxu1 }
 0x3da   : > { %v1478_v41 = vpop.f32.mrb[10].mxu1 }
 0x3db   : > { %v1481_v42 = vrot.slane %v1476_v39, 4  ;;  %v1488_v43 = vmul.f32 %v1476_v39, %v1476_v39  ;;  %v1956_v44 = vpop.f32.mrb[11].mxu1 }
 0x3dd   : > { %v1482_v45 = vadd.f32 %v1481_v42, %v1476_v39  ;;  %v1489_v46 = vrot.slane %v1488_v43, 4 }
 0x3df   : > { %v1483_v47 = vrot.slane %v1482_v45, 2  ;;  %v1490_v48 = vadd.f32 %v1489_v46, %v1488_v43 }
 0x3e1   : > { %v1484_v49 = vadd.f32 %v1483_v47, %v1482_v45  ;;  %v1491_v50 = vrot.slane %v1490_v48, 2 }
 0x3e3   : > { %v1485_v51 = vrot.slane %v1484_v49, 1  ;;  %v1492_v4 = vadd.f32 %v1491_v50, %v1490_v48 }
 0x3e5   : > { %v1486_v52 = vadd.f32 %v1485_v51, %v1484_v49  ;;  %v1493_v53 = vrot.slane %v1492_v4, 1 }
 0x3e7   : > { %v1487_v54 = vmul.f32 0.125, %v1486_v52  ;;  %v1494_v55 = vadd.f32 %v1493_v53, %v1492_v4 }
 0x3e9   : > { %v1495_v56 = vmul.f32 0.125, %v1494_v55  ;;  %v1496_v57 = vmul.f32 %v1487_v54, %v1487_v54  ;;  %v1499_v61 = vsub.f32 %v1476_v39, %v1487_v54 }
 0x3eb   : > { %v1497_v58 = vsub.f32 %v1495_v56, %v1496_v57 }
 0x3ed   : > { %v1498_v59 = vmax.f32 %v1497_v58, 0.0 }
 0x3ef   : > { %v1500_v60 = vadd.f32 1e-05, %v1498_v59 }
 0x3f1   : > { %2064 = vrsqrt.f32 %v1500_v60 }
 0x3fb   : > { %v2065_v62 = vpop.eup %2064 }
 0x3fc   : > { %v1502_v0 = vmul.f32 %v2065_v62, %v1499_v61 }
 0x3fe   : > { %v1510_v2 = vmul.f32 %v1790_v63, %v1502_v0 }
 0x400   : > { %v1518_v3 = vadd.f32 %v1791_v1, %v1510_v2 }
 0x402   : > { %v1519_v5 = vmax.f32 %v1518_v3, 0.0 }
 0x404   : > { %v1520_v6 = vpack.c.bf16 %v1519_v5, %v1519_v5 }
 0x406   : > { %1974 = vmatmul.mubr.bf16.vlgmr.msra.gmra.mrb[12].mxu0 %v1520_v6 }
 0x4d9   : > { %v1626_v8 = vpop.f32.mrb[12].mxu0 }
 0x4da   : > { %v1627_v9 = vadd.f32 %v1792_v7, %v1626_v8  ;;  %v1975_v10 = vpop.f32.mrb[13].mxu0 }
 0x4db   : > { %v1629_v11 = vpop.f32.mrb[14].mxu0 }
 0x4dc   : > { %1632 = vst [vmem:[%s689_s1] sm:$0xff] %v1627_v9  ;;  %v1976_v12 = vpop.f32.mrb[15].mxu0 }
 0x4dd PF: > { %s33_s3 = sadd.s32 1, %s2072_s3  }
 0x4de   : > { %p30_p4 = scmp.ge.s32.totalorder %s33_s3, 4  }
 0x4e0   :  { %32 = sbr.rel (!%p30_p4) target bundleno = 8 (0x8), region = 146 }

</bundles_post_ra>
